<compile_context>
chip_gen: v7x
topology: tpu7x:2x2x1
jax: 0.10.0
libtpu: 0.0.40
codegen_flags: <defaults>
</compile_context>

<pallas_src>
import functools

import jax
import jax.numpy as jnp
from jax.experimental import pallas as pl
from jax.experimental.pallas import tpu as pltpu


def _swiglu_kernel(x_ref, wuv_ref, w2_ref, o_ref, acc_ref, *, tf):
    ff = pl.program_id(1)

    @pl.when(ff == 0)
    def _():
        acc_ref[...] = jnp.zeros_like(acc_ref)

    x = x_ref[...]

    # Fused up-projection: a single MXU matmul produces both the gate half (u)
    # and the value half (v) of this d_ff tile.  The packed weight tile is
    # [W1^T tile | Wv^T tile] along lanes, so the split is a 128-aligned slice.
    uv = jnp.dot(x, wuv_ref[...], preferred_element_type=jnp.float32)
    u = uv[:, :tf]
    v = uv[:, tf:]

    # SiLU + gate in f32 (sigmoid lowers to the EUP slot, free next to MXU work).
    g = u * jax.nn.sigmoid(u)
    h = (g * v).astype(w2_ref.dtype)  # drop back to weight dtype for the down-proj

    # Reduction over d_ff tiles into the resident f32 accumulator.
    acc_ref[...] += jnp.dot(h, w2_ref[...], preferred_element_type=jnp.float32)

    @pl.when(ff == pl.num_programs(1) - 1)
    def _():
        # Single lane-dense store of the (tm, d_model) output tile.
        o_ref[...] = acc_ref[...].astype(o_ref.dtype)


def _largest_divisor_tile(dim, target, mult):
    """Largest multiple-of-`mult` divisor of `dim` that is <= target (falls back to dim)."""
    if dim % mult != 0 or dim <= mult:
        return dim
    t = min((target // mult) * mult, (dim // mult) * mult)
    t = max(t, mult)
    while t > mult and dim % t != 0:
        t -= mult
    return t if dim % t == 0 else dim


@functools.partial(jax.jit, static_argnames=("tm", "tf", "vmem_limit_bytes"))
def swiglu_pallas(x, w1, wv, w2, *, tm=256, tf=512, vmem_limit_bytes=64 * 1024 * 1024):
    """Fused SwiGLU forward.

    x : (..., d_model)
    w1: (d_ff, d_model)   -- layer1.weight   (PyTorch nn.Linear layout)
    wv: (d_ff, d_model)   -- linear_v.weight
    w2: (d_model, d_ff)   -- layer2.weight

    Tile guidance (bf16 weights): v6e (128 MiB VMEM) tm=256-512, tf=1024-2048;
    v7x (64 MiB VMEM) tm=256, tf=512-768; v5e tm=128-256, tf=512-1024.
    """
    d_model = x.shape[-1]
    d_ff = w1.shape[0]
    out_dtype = x.dtype
    orig_shape = x.shape

    # Flatten to rows; all reshaping lives in the wrapper, never in-kernel.
    x2 = x.reshape(-1, d_model)
    n = x2.shape[0]

    # --- tile sizing -------------------------------------------------------
    # Row tile: multiple of 8 sublanes, no larger than the (padded) row count.
    n_rows_8 = max(8, ((n + 7) // 8) * 8)
    tm = max(8, min(((tm + 7) // 8) * 8, n_rows_8))

    # d_ff tile: largest 128-multiple divisor of d_ff <= requested tf, further
    # clamped so double-buffered weight tiles (wuv + w2) stay within ~60% of VMEM.
    w_bytes = w1.dtype.itemsize
    if d_ff % 128 == 0:
        tf = _largest_divisor_tile(d_ff, tf, 128)
        while tf > 128 and 6 * tf * d_model * w_bytes > 0.6 * vmem_limit_bytes:
            new_tf = _largest_divisor_tile(d_ff, tf - 128, 128)
            if new_tf >= tf:
                break
            tf = new_tf
    else:
        tf = d_ff  # no clean 128-aligned divisor; single reduction step

    n_pad = ((n + tm - 1) // tm) * tm
    if n_pad != n:
        x2 = jnp.pad(x2, ((0, n_pad - n), (0, 0)))

    n_ff_tiles = d_ff // tf

    # --- weight packing (wrapper-side layout plumbing, no in-kernel XLU) ----
    # Interleave W1^T and Wv^T per d_ff tile: packed block ff = [W1^T_ff | Wv^T_ff].
    w1_t = jnp.transpose(w1).reshape(d_model, n_ff_tiles, tf)
    wv_t = jnp.transpose(wv).reshape(d_model, n_ff_tiles, tf)
    wuv = jnp.concatenate([w1_t, wv_t], axis=-1).reshape(d_model, 2 * d_ff)
    w2_t = jnp.transpose(w2)  # (d_ff, d_model)

    grid = (n_pad // tm, n_ff_tiles)

    out = pl.pallas_call(
        functools.partial(_swiglu_kernel, tf=tf),
        out_shape=jax.ShapeDtypeStruct((n_pad, d_model), out_dtype),
        grid_spec=pltpu.PrefetchScalarGridSpec(
            num_scalar_prefetch=0,
            grid=grid,
            in_specs=[
                # x tile: constant block index across ff -> stays resident in VMEM.
                pl.BlockSpec((tm, d_model), lambda i, ff: (i, 0)),
                # packed [W1^T | Wv^T] tile for this d_ff block.
                pl.BlockSpec((d_model, 2 * tf), lambda i, ff: (0, ff)),
                # W2^T tile for this d_ff block.
                pl.BlockSpec((tf, d_model), lambda i, ff: (ff, 0)),
            ],
            # Same output block for every ff step -> resident across the reduction.
            out_specs=pl.BlockSpec((tm, d_model), lambda i, ff: (i, 0)),
            scratch_shapes=[pltpu.VMEM((tm, d_model), jnp.float32)],
        ),
        compiler_params=pltpu.CompilerParams(
            dimension_semantics=("parallel", "arbitrary"),
            vmem_limit_bytes=vmem_limit_bytes,
        ),
    )(x2, wuv, w2_t)

    return out[:n].reshape(orig_shape)


def swiglu_reference(x, w1, wv, w2):
    xf = x.astype(jnp.float32)
    g = jax.nn.silu(xf @ w1.astype(jnp.float32).T)
    v = xf @ wv.astype(jnp.float32).T
    return ((g * v) @ w2.astype(jnp.float32).T).astype(x.dtype)


if __name__ == "__main__":
    key = jax.random.PRNGKey(0)
    batch, seq, d_model, d_ff = 2, 8, 128, 512

    kx, k1, kv, k2 = jax.random.split(key, 4)
    x = jax.random.normal(kx, (batch, seq, d_model), dtype=jnp.float32)
    w1 = jax.random.normal(k1, (d_ff, d_model), dtype=jnp.float32) * 0.05
    wv = jax.random.normal(kv, (d_ff, d_model), dtype=jnp.float32) * 0.05
    w2 = jax.random.normal(k2, (d_model, d_ff), dtype=jnp.float32) * 0.05

    # tf=256 -> 2 reduction steps over d_ff, exercising the accumulator path.
    out = swiglu_pallas(x, w1, wv, w2, tm=128, tf=256)
    out = jax.block_until_ready(out)

    ref = swiglu_reference(x, w1, wv, w2)
    assert out.shape == ref.shape, (out.shape, ref.shape)
    assert jnp.allclose(out, ref, atol=1e-3, rtol=1e-3), (
        "max abs err = %g" % float(jnp.max(jnp.abs(out - ref)))
    )

    print("KERNEL_OK")
</pallas_src>

<mosaic_0001>
module attributes {stable_mosaic.version = 11 : i64} {
  func.func @_swiglu_kernel(%arg0: i32, %arg1: i32, %arg2: memref<16x128xf32, #tpu.memory_space<vmem>>, %arg3: memref<128x512xf32, #tpu.memory_space<vmem>>, %arg4: memref<256x128xf32, #tpu.memory_space<vmem>>, %arg5: memref<16x128xf32, #tpu.memory_space<vmem>>, %arg6: memref<16x128xf32, #tpu.memory_space<vmem>>) attributes {dimension_semantics = [#tpu.dimension_semantics<parallel>, #tpu.dimension_semantics<arbitrary>], iteration_bounds = array<i64: 1, 2>, scalar_prefetch = 0 : i64, scratch_operands = 1 : i64, tpu.core_type = #tpu.core_type<tc>, window_params = [{transform_indices = @transform_0, window_bounds = array<i64: 16, 128>}, {transform_indices = @transform_1, window_bounds = array<i64: 128, 512>}, {transform_indices = @transform_2, window_bounds = array<i64: 256, 128>}, {transform_indices = @transform_3, window_bounds = array<i64: 16, 128>}]} {
    %c0_i32 = arith.constant 0 : i32
    %0 = arith.cmpi eq, %arg1, %c0_i32 : i32
    %1 = arith.extui %0 : i1 to i32
    %c0_i32_0 = arith.constant 0 : i32
    %2 = arith.cmpi ne, %1, %c0_i32_0 : i32
    scf.if %2 {
      %cst_13 = arith.constant 0.000000e+00 : f32
      %23 = vector.broadcast %cst_13 : f32 to vector<16x128xf32>
      %c0_14 = arith.constant 0 : index
      %c0_15 = arith.constant 0 : index
      %24 = vector.load %arg6[%c0_14, %c0_15] : memref<16x128xf32, #tpu.memory_space<vmem>>, vector<16x128xf32>
      tpu.vector_store %arg6[%c0_14, %c0_15], %23 {strides = array<i32>} : memref<16x128xf32, #tpu.memory_space<vmem>>, vector<16x128xf32>,
    } else {
    }
    %c0 = arith.constant 0 : index
    %c0_1 = arith.constant 0 : index
    %3 = vector.load %arg2[%c0, %c0_1] : memref<16x128xf32, #tpu.memory_space<vmem>>, vector<16x128xf32>
    %c0_2 = arith.constant 0 : index
    %c0_3 = arith.constant 0 : index
    %4 = vector.load %arg3[%c0_2, %c0_3] : memref<128x512xf32, #tpu.memory_space<vmem>>, vector<128x512xf32>
    %cst = arith.constant dense<0.000000e+00> : vector<16x512xf32>
    %5 = tpu.matmul %3, %4, %cst {dimension_numbers = #tpu.dot_dimension_numbers<[1], [0], [0], [1], [0, 0, 1, 1], [], []>} : vector<16x128xf32>, vector<128x512xf32>, vector<16x512xf32> -> vector<16x512xf32>
    %6 = vector.extract_strided_slice %5 {offsets = [0, 0], sizes = [16, 256], strides = [1, 1]} : vector<16x512xf32> to vector<16x256xf32>
    %7 = vector.extract_strided_slice %5 {offsets = [0, 256], sizes = [16, 256], strides = [1, 1]} : vector<16x512xf32> to vector<16x256xf32>
    %8 = arith.negf %6 : vector<16x256xf32>
    %9 = math.exp %8 : vector<16x256xf32>
    %cst_4 = arith.constant 1.000000e+00 : f32
    %10 = vector.broadcast %cst_4 : f32 to vector<16x256xf32>
    %11 = arith.addf %10, %9 : vector<16x256xf32>
    %12 = arith.divf %10, %11 : vector<16x256xf32>
    %13 = arith.mulf %6, %12 : vector<16x256xf32>
    %14 = arith.mulf %13, %7 : vector<16x256xf32>
    %c0_5 = arith.constant 0 : index
    %c0_6 = arith.constant 0 : index
    %15 = vector.load %arg6[%c0_5, %c0_6] : memref<16x128xf32, #tpu.memory_space<vmem>>, vector<16x128xf32>
    %c0_7 = arith.constant 0 : index
    %c0_8 = arith.constant 0 : index
    %16 = vector.load %arg4[%c0_7, %c0_8] : memref<256x128xf32, #tpu.memory_space<vmem>>, vector<256x128xf32>
    %cst_9 = arith.constant dense<0.000000e+00> : vector<16x128xf32>
    %17 = tpu.matmul %14, %16, %cst_9 {dimension_numbers = #tpu.dot_dimension_numbers<[1], [0], [0], [1], [0, 0, 1, 1], [], []>} : vector<16x256xf32>, vector<256x128xf32>, vector<16x128xf32> -> vector<16x128xf32>
    %18 = arith.addf %15, %17 : vector<16x128xf32>
    %c0_10 = arith.constant 0 : index
    %c0_11 = arith.constant 0 : index
    %19 = vector.load %arg6[%c0_10, %c0_11] : memref<16x128xf32, #tpu.memory_space<vmem>>, vector<16x128xf32>
    tpu.vector_store %arg6[%c0_10, %c0_11], %18 {strides = array<i32>} : memref<16x128xf32, #tpu.memory_space<vmem>>, vector<16x128xf32>,
    %c1_i32 = arith.constant 1 : i32
    %20 = arith.cmpi eq, %arg1, %c1_i32 : i32
    %21 = arith.extui %20 : i1 to i32
    %c0_i32_12 = arith.constant 0 : i32
    %22 = arith.cmpi ne, %21, %c0_i32_12 : i32
    scf.if %22 {
      %c0_13 = arith.constant 0 : index
      %c0_14 = arith.constant 0 : index
      %23 = vector.load %arg6[%c0_13, %c0_14] : memref<16x128xf32, #tpu.memory_space<vmem>>, vector<16x128xf32>
      %c0_15 = arith.constant 0 : index
      %c0_16 = arith.constant 0 : index
      %24 = vector.load %arg5[%c0_15, %c0_16] : memref<16x128xf32, #tpu.memory_space<vmem>>, vector<16x128xf32>
      tpu.vector_store %arg5[%c0_15, %c0_16], %23 {strides = array<i32>} : memref<16x128xf32, #tpu.memory_space<vmem>>, vector<16x128xf32>,
    } else {
    }
    return
  }
  func.func @transform_0(%arg0: i32, %arg1: i32) -> (i32, i32) {
    %c0_i32 = arith.constant 0 : i32
    %c0_i32_0 = arith.constant 0 : i32
    return %arg0, %c0_i32 : i32, i32
  }
  func.func @transform_1(%arg0: i32, %arg1: i32) -> (i32, i32) {
    %c0_i32 = arith.constant 0 : i32
    %c0_i32_0 = arith.constant 0 : i32
    return %c0_i32, %arg1 : i32, i32
  }
  func.func @transform_2(%arg0: i32, %arg1: i32) -> (i32, i32) {
    %c0_i32 = arith.constant 0 : i32
    %c0_i32_0 = arith.constant 0 : i32
    return %arg1, %c0_i32 : i32, i32
  }
  func.func @transform_3(%arg0: i32, %arg1: i32) -> (i32, i32) {
    %c0_i32 = arith.constant 0 : i32
    %c0_i32_0 = arith.constant 0 : i32
    return %arg0, %c0_i32 : i32, i32
  }
}

</mosaic_0001>

<bundles_post_ra>
// kernel: swiglu_pallas.1
= control target key start
LH: loop header
LB: loop body
LE: loop exit
PB: predicated region body
PF: predicated region fallthrough
CT: control target
= control target key end

     0   :  { %8 = vsyncpa [#allocation4], 0  ;;  %s1565_s0 = inlined_call_operand.hbm [shape: f32[16,128], index: 0, kind: input, shape index: {}]   ;;  %s1566_s1 = inlined_call_operand.hbm [shape: f32[128,1024], index: 1, kind: input, shape index: {}]   ;;  %s1567_s2 = inlined_call_operand.hbm [shape: f32[512,128], index: 2, kind: input, shape index: {}]   ;;  %s1568_s3 = inlined_call_operand.hbm [shape: f32[16,128], index: 3, kind: output, shape index: {}]  }
   0x1   :  { %9 = vsyncpa [#allocation7], 0 }
   0x2   :  { %11 = vsyncpa [#allocation7 + $0x1], 0 }
   0x3   :  { %12 = vsyncpa [#allocation5], 0  ;;  %s1230_s12 = smov 0   ;;  %s1232_s13 = smov 0  }
   0x4   :  { %s1234_s14 = smov 0   ;;  %s1236_s15 = smov 0  }
   0x5   :  { %s1238_s16 = smov 0   ;;  %s1240_s17 = smov 0  }
   0x6 LB: > { %s27_s18 = sadd.s32 1, %s1191_s16  ;;  %s63_s19 = sadd.s32 1, %s1183_s14  ;;  %s1195_s17 = sphi %s1240_s17, %s18_s17   ;;  %s1191_s16 = sphi %s1238_s16, %s1590_s16   ;;  %s1187_s15 = sphi %s1236_s15, %s1589_s15   ;;  %s1183_s14 = sphi %s1234_s14, %s1588_s14   ;;  %s1179_s13 = sphi %s1232_s13, %s1587_s13   ;;  %s1175_s12 = sphi %s1230_s12, %s1586_s12  }
   0x7   : > { %p28_p0 = scmp.ge.s32.totalorder %s27_s18, 2  ;;  %p70_p1 = scmp.ne.s32.totalorder %s1183_s14, %s1179_s13 }
   0x8   : > { %p71_p2 = scmp.eq.s32.totalorder %s1195_s17, 0  ;;  %p944_p4 = scmp.lt.s32.totalorder %s1195_s17, 2 }
   0x9   : > { %s1592_s18 = smov (%p28_p0, %s27_s18), 0  ;;  %s168_s21 = sand.u32 1, %s1195_s17  }
   0xa   : > { %p72_p3 = por %p71_p2, %p70_p1  ;;  %s60_s20 = ssub.s32 %s1191_s16, %s1592_s18 }
   0xb   : > { %p61_p5 = scmp.eq.s32.totalorder %s60_s20, 0  ;;  %s170_s22 = sand.u32 1, %s1183_s14  }
   0xc   : > { %s768_s23 = sshll.u32 %s1191_s16, 9  ;;  %s748_s25 = sshll.u32 %s170_s22, 9 }
   0xd   : > { %s1274_s24 = scalar_select %p61_p5, %s1183_s14, %s63_s19  }
   0xe   : > { %s1281_s28 = scalar_lea.hbm %s1566_s1, %s768_s23  ;;  %p1283_p6 = pnand %p944_p4, %p72_p3 }
   0xf   : > { %s172_s30 = scalar_lea.vmem [#allocation6], %s748_s25  ;;  %s1289_s5 = scalar_lea.sflag [#allocation7], %s168_s21 }
  0x10   : > { %s1575_s29 = scalar_select %p1283_p6, 1, 0 }
  0x11   : > { %s179_s4 = sshll.u32 %s172_s30, 4  ;;  %s1023_s6 = scalar_lea.hbm %s1281_s28, 8192  ;;  %s1287_s4 = int_to_ptr.vmem [resolvable:$true] %s179_s4 }
  0x12   : > { %p1024_p7 = scmp.ne.s32.totalorder %s1281_s28, %s1023_s6  ;;  %p1570_p8 = pneg %p1283_p6 }
  0x13   : > { %s1028_s9 = scalar_lea.hbm %s1566_s1, 16384  ;;  %p1029_p11 = scmp.lt.u32.totalorder %s1281_s28, %s1566_s1 }
  0x14   : > { %p1026_p9 = pnand %p1570_p8, %p1024_p7  ;;  %p1030_p12 = scmp.lt.u32.totalorder %s1028_s9, %s1023_s6 }
  0x15   : > { %p1032_p0 = scmp.lt.u32.totalorder %s1023_s6, %s1281_s28 }
  0x16   : > { %p1027_p10 = pneg %p1026_p9  ;;  %p1031_p13 = por %p1030_p12, %p1029_p11 }
  0x18   : > { %p1033_p1 = por %p1032_p0, %p1031_p13 }
  0x1a   : > { %p1034_p2 = pnand %p1033_p1, %p1027_p10 }
  0x1c   : > { %1037 = shalt.err (!%p1034_p2)
}
  0x1d   : > { %s1038_s19 = scalar_lea.vmem %s1287_s4, 8192  ;;  %s1197_s20 = smov [#allocation6]  }
  0x1e   : > { %p1039_p3 = scmp.ne.s32.totalorder %s1287_s4, %s1038_s19  ;;  %s1043_s21 = sshll.u32 %s1197_s20, 4  ;;  %s1044_s21 = int_to_ptr.vmem [resolvable:$false] %s1043_s21 }
  0x1f   : > { %s1045_s23 = scalar_lea.vmem %s1044_s21, 16384  ;;  %p1046_p7 = scmp.lt.s32.totalorder %s1287_s4, %s1044_s21 }
  0x20   : > { %p1041_p4 = pnand %p1039_p3, %p1570_p8  ;;  %p1047_p9 = scmp.lt.s32.totalorder %s1045_s23, %s1038_s19 }
  0x22   : > { %p1042_p5 = pneg %p1041_p4  ;;  %p1048_p11 = por %p1047_p9, %p1046_p7 }
  0x24   : > { %p1049_p12 = pnand %p1048_p11, %p1042_p5 }
  0x26   : > { %1052 = shalt.err (!%p1049_p12)
}
  0x27   : > { %s1198_s25 = smov 1024   ;;  %s1199_s26 = smov 512  }
  0x28   : > { %s1200_s27 = smov 32   ;;  %s1318_s30 = sadd.s32 4294967295, %s1195_s17  }
  0x29   : > { %939 = dma.hbm_to_vmem [thread:$0]  (!%p1283_p6), %s1281_s28, 8192, %s1287_s4, %s1289_s5, %s1198_s25, %s1199_s26, %s1200_s27  }
  0x2a   : > { %p76_p10 = scmp.ne.s32.totalorder %s1179_s13, %s1175_s12  ;;  %p1569_p13 = scmp.eq.s32.totalorder %s1318_s30, 0 }
  0x2b   : > { %p745_p0 = scmp.ge.s32.totalorder %s1195_s17, 1  ;;  %p139_p1 = scmp.lt.s32.totalorder %s1195_s17, 3 }
  0x2c   : > { %p1327_p2 = por %p1569_p13, %p76_p10  ;;  %s1201_s28 = smov [#allocation3]  }
  0x2d   : > { %p1331_p3 = pnand %p745_p0, %p139_p1  ;;  %s154_s4 = sshll.u32 %s1201_s28, 4  ;;  %s1335_s4 = int_to_ptr.vmem [resolvable:$true] %s154_s4 }
  0x2e   : > { %s1576_s6 = scalar_select %p1327_p2, 1, 0 }
  0x2f   : > { %s1577_s7 = scalar_select %p1331_p3, 1, 0 }
  0x30   : > { %p932_p4 = pneg %p1331_p3  ;;  %s751_s12 = sshll.u32 %s170_s22, 8 }
  0x31   : > { %s769_s8 = sshll.u32 %s1191_s16, 12  ;;  %s193_s20 = scalar_lea.vmem [#allocation8], %s751_s12 }
  0x32   : > { %p1344_p5 = pnand %p932_p4, %p1569_p13  ;;  %s1351_s19 = scalar_lea.hbm %s1567_s2, %s769_s8 }
  0x33   : > { %s200_s21 = sshll.u32 %s193_s20, 4  ;;  %s1053_s22 = scalar_lea.hbm %s1565_s0, 256  ;;  %s1353_s21 = int_to_ptr.vmem [resolvable:$true] %s200_s21 }
  0x34   : > { %p1054_p7 = scmp.ne.s32.totalorder %s1565_s0, %s1053_s22  ;;  %p1055_p9 = pneg %p1344_p5 }
  0x35   : > { %p1060_p10 = scmp.lt.u32.totalorder %s1053_s22, %s1565_s0 }
  0x36   : > { %p1056_p11 = pnand %p1055_p9, %p1054_p7 }
  0x38   : > { %p1057_p12 = pneg %p1056_p11 }
  0x3a   : > { %p1062_p0 = pnand %p1060_p10, %p1057_p12 }
  0x3c   : > { %1065 = shalt.err (!%p1062_p0)
}
  0x3d   : > { %s1066_s12 = scalar_lea.vmem %s1335_s4, 256  ;;  %p1074_p8 = scmp.lt.s32.totalorder %s1335_s4, %s1335_s4 }
  0x3e   : > { %p1067_p1 = scmp.ne.s32.totalorder %s1335_s4, %s1066_s12  ;;  %p1075_p2 = scmp.lt.s32.totalorder %s1066_s12, %s1066_s12 }
  0x40   : > { %p1069_p4 = pnand %p1067_p1, %p1055_p9  ;;  %p1076_p3 = por %p1075_p2, %p1074_p8 }
  0x42   : > { %p1070_p13 = pneg %p1069_p4 }
  0x44   : > { %p1077_p6 = pnand %p1076_p3, %p1070_p13 }
  0x46   : > { %1080 = shalt.err (!%p1077_p6)
}
  0x47   : > { %s1202_s8 = smov 128   ;;  %s1203_s11 = smov 8  }
  0x48   : > { %935 = dma.hbm_to_vmem [thread:$0]  (!%p1344_p5), %s1565_s0, 256, %s1335_s4, [#allocation4], %s1202_s8, %s1202_s8, %s1203_s11  }
  0x49   : > { %s1081_s25 = scalar_lea.hbm %s1351_s19, 4096  ;;  %p1579_p6 = scmp.ne.s32.totalorder %s1575_s29, 0 }
  0x4a   : > { %p1082_p8 = scmp.ne.s32.totalorder %s1351_s19, %s1081_s25  ;;  %s1086_s27 = scalar_lea.hbm %s1567_s2, 8192 }
  0x4b   : > { %p1580_p13 = pneg %p1579_p6  ;;  %p1087_p7 = scmp.lt.u32.totalorder %s1351_s19, %s1567_s2 }
  0x4c   : > { %p1088_p9 = scmp.lt.u32.totalorder %s1086_s27, %s1081_s25  ;;  %p1090_p12 = scmp.lt.u32.totalorder %s1081_s25, %s1351_s19 }
  0x4d   : > { %p1084_p2 = pnand %p1082_p8, %p1580_p13 }
  0x4e   : > { %p1089_p11 = por %p1088_p9, %p1087_p7 }
  0x4f   : > { %p1085_p3 = pneg %p1084_p2 }
  0x50   : > { %p1091_p10 = por %p1090_p12, %p1089_p11 }
  0x52   : > { %p1092_p0 = pnand %p1091_p10, %p1085_p3 }
  0x54   : > { %1095 = shalt.err (!%p1092_p0)
}
  0x55   : > { %s1096_s4 = scalar_lea.vmem %s1353_s21, 4096  ;;  %p1581_p1 = pmov %p1580_p13 }
  0x56   : > { %p1097_p5 = scmp.ne.s32.totalorder %s1353_s21, %s1096_s4  ;;  %s1204_s9 = smov [#allocation8]  }
  0x57   : > { %s1101_s12 = sshll.u32 %s1204_s9, 4  ;;  %s1102_s12 = int_to_ptr.vmem [resolvable:$false] %s1101_s12 }
  0x58   : > { %p1099_p4 = pnand %p1097_p5, %p1581_p1  ;;  %s1103_s20 = scalar_lea.vmem %s1102_s12, 8192 }
  0x59   : > { %p1104_p13 = scmp.lt.s32.totalorder %s1353_s21, %s1102_s12  ;;  %p1105_p2 = scmp.lt.s32.totalorder %s1103_s20, %s1096_s4 }
  0x5a   : > { %p1100_p8 = pneg %p1099_p4 }
  0x5b   : > { %p1106_p7 = por %p1105_p2, %p1104_p13 }
  0x5d   : > { %p1107_p9 = pnand %p1106_p7, %p1100_p8 }
  0x5f   : > { %1110 = shalt.err (!%p1107_p9)
}
  0x60   : > { %942 = dma.hbm_to_vmem [thread:$0]  (!%p1579_p6), %s1351_s19, 4096, %s1353_s21, %s1289_s5, %s1202_s8, %s1202_s8, %s1203_s11  }
  0x61   : > { %p1582_p3 = scmp.ne.s32.totalorder %s1577_s7, 0 }
  0x62   : > { %p1583_p11 = scmp.eq.s32.totalorder (!%p1582_p3), %s1318_s30, 0 }
  0x63   : > { %212 = sbr.rel (%p1582_p3) target bundleno = 657 (0x291), region = 32 }
  0x6a   : > { %1162 = dma.done.wait (%p1583_p11), [#allocation4], 256   ;;  %p1584_p12 = pmov %p1583_p11 }
  0x6b   : > { %s218_s29 = sand.u32 1, %s1318_s30   ;;  %s220_s23 = sand.u32 1, %s1179_s13  }
  0x6c   : > { %1164 = vsyncadd (%p1584_p12), [#allocation4], 4294967040  ;;  %s756_s25 = sshll.u32 %s220_s23, 9  ;;  %s219_s22 = scalar_lea.sflag [#allocation7], %s218_s29 }
  0x6d   : > { %s1414_s26 = scalar_lea.vmem [#allocation6], %s756_s25  ;;  %p1585_p10 = scmp.ne.s32.totalorder %s1576_s6, 0 }
  0x6f   : > { %1166 = dma.done.wait (%p1585_p10), %s219_s22, 12288  }
  0x70   : > { %1168 = vsyncadd (%p1585_p10), %s219_s22, 4294955008  ;;  %s757_s5 = sshll.u32 %s220_s23, 8  ;;  %p758_p6 = scmp.ne.s32.totalorder %s1187_s15, 0 }
  0x71   : > { %s1420_s7 = scalar_lea.vmem [#allocation8], %s757_s5  ;;  %v1205_v0 = vmov (!%p758_p6), 0.0  }
  0x72   : > { %261 = sbr.rel (%p758_p6) target bundleno = 121 (0x79), region = 48  ;;  %262 = vst [vmem:[#allocation2] sm:$0xff] (!%p758_p6), %v1205_v0  ;;  %263 = vst [vmem:[#allocation2 + $0x8] sm:$0xff] (!%p758_p6), %v1205_v0 }
  0x79 PF: > { %v267_v1 = vld [vmem:[%s1414_s26 + $0x8] sm:$0xff]  ;;  %v266_v3 = vld [vmem:[%s1414_s26] sm:$0xff]  ;;  %v1206_v8 = vmov 0.0   ;;  %v269_v25 = vld [vmem:[%s1414_s26 + $0x18] sm:$0xff]  ;;  %p763_p0 = scmp.ne.s32.totalorder %s1187_s15, 1 }
  0x7a   : > { %v271_v2 = vld [vmem:[%s1414_s26 + $0x28] sm:$0xff]  ;;  %v270_v5 = vld [vmem:[%s1414_s26 + $0x20] sm:$0xff]  ;;  %394 = vmatprep.mubr.f32.mxu0 %v1206_v8  ;;  %471 = vmatprep.mubr.f32.mxu1 %v1206_v8  ;;  %v273_v26 = vld [vmem:[%s1414_s26 + $0x38] sm:$0xff] }
  0x7b   : > { %v808_v4 = vpack.c.bf16 %v271_v2, %v267_v1  ;;  %v275_v6 = vld [vmem:[%s1414_s26 + $0x48] sm:$0xff]  ;;  %v810_v9 = vpack.c.bf16 %v270_v5, %v266_v3  ;;  %v274_v11 = vld [vmem:[%s1414_s26 + $0x40] sm:$0xff]  ;;  %v840_v29 = vpack.c.bf16 %v273_v26, %v269_v25  ;;  %v268_v30 = vld [vmem:[%s1414_s26 + $0x10] sm:$0xff] }
  0x7c   : > { %v279_v7 = vld [vmem:[%s1414_s26 + $0x68] sm:$0xff]  ;;  %v278_v12 = vld [vmem:[%s1414_s26 + $0x60] sm:$0xff]  ;;  %v272_v32 = vld [vmem:[%s1414_s26 + $0x30] sm:$0xff] }
  0x7d   : > { %v812_v10 = vpack.c.bf16 %v279_v7, %v275_v6  ;;  %v283_v13 = vld [vmem:[%s1414_s26 + $0x88] sm:$0xff]  ;;  %809 = vmatprep.subr.bf16.mxu0 %v808_v4  ;;  %v814_v15 = vpack.c.bf16 %v278_v12, %v274_v11  ;;  %v282_v17 = vld [vmem:[%s1414_s26 + $0x80] sm:$0xff]  ;;  %841 = vmatprep.subr.bf16.mxu1 %v840_v29  ;;  %v842_v35 = vpack.c.bf16 %v272_v32, %v268_v30  ;;  %v277_v36 = vld [vmem:[%s1414_s26 + $0x58] sm:$0xff] }
  0x7e   : > { %v287_v14 = vld [vmem:[%s1414_s26 + $0xa8] sm:$0xff]  ;;  %811 = vmatpush1.bf16.msra.mxu0 %v810_v9  ;;  %v286_v18 = vld [vmem:[%s1414_s26 + $0xa0] sm:$0xff]  ;;  %v281_v37 = vld [vmem:[%s1414_s26 + $0x78] sm:$0xff] }
  0x7f   : > { %813 = vmatprep.subr.bf16.mxu0 %v812_v10  ;;  %v816_v16 = vpack.c.bf16 %v287_v14, %v283_v13  ;;  %v291_v19 = vld [vmem:[%s1414_s26 + $0xc8] sm:$0xff]  ;;  %v818_v21 = vpack.c.bf16 %v286_v18, %v282_v17  ;;  %v290_v22 = vld [vmem:[%s1414_s26 + $0xc0] sm:$0xff]  ;;  %v844_v39 = vpack.c.bf16 %v281_v37, %v277_v36  ;;  %v276_v40 = vld [vmem:[%s1414_s26 + $0x50] sm:$0xff]  ;;  %843 = vmatpush1.bf16.msra.mxu1 %v842_v35 }
  0x80   : > { %v295_v20 = vld [vmem:[%s1414_s26 + $0xe8] sm:$0xff]  ;;  %v294_v24 = vld [vmem:[%s1414_s26 + $0xe0] sm:$0xff]  ;;  %v280_v41 = vld [vmem:[%s1414_s26 + $0x70] sm:$0xff] }
  0x81   : > { %v820_v23 = vpack.c.bf16 %v295_v20, %v291_v19  ;;  %v299_v27 = vld [vmem:[%s1414_s26 + $0x108] sm:$0xff]  ;;  %v298_v31 = vld [vmem:[%s1414_s26 + $0x100] sm:$0xff]  ;;  %v822_v33 = vpack.c.bf16 %v294_v24, %v290_v22  ;;  %v285_v42 = vld [vmem:[%s1414_s26 + $0x98] sm:$0xff]  ;;  %v846_v45 = vpack.c.bf16 %v280_v41, %v276_v40  ;;  %845 = vmatprep.subr.bf16.mxu1 %v844_v39 }
  0x82   : > { %815 = vmatpush1.bf16.msra.mxu0 %v814_v15  ;;  %v303_v28 = vld [vmem:[%s1414_s26 + $0x128] sm:$0xff]  ;;  %v302_v34 = vld [vmem:[%s1414_s26 + $0x120] sm:$0xff]  ;;  %v289_v46 = vld [vmem:[%s1414_s26 + $0xb8] sm:$0xff] }
  0x83   : > { %817 = vmatprep.subr.bf16.mxu0 %v816_v16  ;;  %v824_v38 = vpack.c.bf16 %v303_v28, %v299_v27  ;;  %v307_v43 = vld [vmem:[%s1414_s26 + $0x148] sm:$0xff]  ;;  %v848_v47 = vpack.c.bf16 %v289_v46, %v285_v42  ;;  %v284_v48 = vld [vmem:[%s1414_s26 + $0x90] sm:$0xff]  ;;  %v826_v50 = vpack.c.bf16 %v302_v34, %v298_v31  ;;  %v293_v51 = vld [vmem:[%s1414_s26 + $0xd8] sm:$0xff]  ;;  %847 = vmatpush1.bf16.msra.mxu1 %v846_v45 }
  0x84   : > { %v311_v44 = vld [vmem:[%s1414_s26 + $0x168] sm:$0xff]  ;;  %v288_v49 = vld [vmem:[%s1414_s26 + $0xb0] sm:$0xff]  ;;  %v297_v52 = vld [vmem:[%s1414_s26 + $0xf8] sm:$0xff] }
  0x85   : > { %v828_v53 = vpack.c.bf16 %v311_v44, %v307_v43  ;;  %v306_v54 = vld [vmem:[%s1414_s26 + $0x140] sm:$0xff]  ;;  %v315_v56 = vld [vmem:[%s1414_s26 + $0x188] sm:$0xff]  ;;  %v850_v58 = vpack.c.bf16 %v288_v49, %v284_v48  ;;  %849 = vmatprep.subr.bf16.mxu1 %v848_v47  ;;  %v852_v59 = vpack.c.bf16 %v297_v52, %v293_v51  ;;  %v292_v60 = vld [vmem:[%s1414_s26 + $0xd0] sm:$0xff] }
  0x86   : > { %819 = vmatpush1.bf16.msra.mxu0 %v818_v21  ;;  %v310_v55 = vld [vmem:[%s1414_s26 + $0x160] sm:$0xff]  ;;  %v319_v57 = vld [vmem:[%s1414_s26 + $0x1a8] sm:$0xff]  ;;  %v296_v61 = vld [vmem:[%s1414_s26 + $0xf0] sm:$0xff] }
  0x87   : > { %821 = vmatprep.subr.bf16.mxu0 %v820_v23  ;;  %v830_v62 = vpack.c.bf16 %v310_v55, %v306_v54  ;;  %v301_v63 = vld [vmem:[%s1414_s26 + $0x118] sm:$0xff]  ;;  %v832_v1 = vpack.c.bf16 %v319_v57, %v315_v56  ;;  %v314_v2 = vld [vmem:[%s1414_s26 + $0x180] sm:$0xff]  ;;  %v323_v4 = vld [vmem:[%s1414_s26 + $0x1c8] sm:$0xff]  ;;  %851 = vmatpush1.bf16.msra.mxu1 %v850_v58  ;;  %v854_v6 = vpack.c.bf16 %v296_v61, %v292_v60 }
  0x88   : > { %v305_v0 = vld [vmem:[%s1414_s26 + $0x138] sm:$0xff]  ;;  %v318_v3 = vld [vmem:[%s1414_s26 + $0x1a0] sm:$0xff]  ;;  %v327_v5 = vld [vmem:[%s1414_s26 + $0x1e8] sm:$0xff]  ;;  %853 = vmatprep.subr.bf16.mxu1 %v852_v59 }
  0x89   : > { %v856_v7 = vpack.c.bf16 %v305_v0, %v301_v63  ;;  %v300_v9 = vld [vmem:[%s1414_s26 + $0x110] sm:$0xff]  ;;  %v834_v11 = vpack.c.bf16 %v318_v3, %v314_v2  ;;  %v309_v12 = vld [vmem:[%s1414_s26 + $0x158] sm:$0xff]  ;;  %v836_v14 = vpack.c.bf16 %v327_v5, %v323_v4  ;;  %v322_v15 = vld [vmem:[%s1414_s26 + $0x1c0] sm:$0xff] }
  0x8a   : > { %823 = vmatpush1.bf16.msra.mxu0 %v822_v33  ;;  %v304_v10 = vld [vmem:[%s1414_s26 + $0x130] sm:$0xff]  ;;  %v313_v13 = vld [vmem:[%s1414_s26 + $0x178] sm:$0xff]  ;;  %v326_v16 = vld [vmem:[%s1414_s26 + $0x1e0] sm:$0xff] }
  0x8b   : > { %825 = vmatprep.subr.bf16.mxu0 %v824_v38  ;;  %855 = vmatpush1.bf16.msra.mxu1 %v854_v6  ;;  %v858_v17 = vpack.c.bf16 %v304_v10, %v300_v9  ;;  %v860_v18 = vpack.c.bf16 %v313_v13, %v309_v12  ;;  %v308_v19 = vld [vmem:[%s1414_s26 + $0x150] sm:$0xff]  ;;  %v838_v21 = vpack.c.bf16 %v326_v16, %v322_v15  ;;  %v317_v22 = vld [vmem:[%s1414_s26 + $0x198] sm:$0xff]  ;;  %v534_v37 = vld [vmem:[%s1420_s7 + $0x80] sm:$0xff] }
  0x8c   : > { %857 = vmatprep.subr.bf16.mxu1 %v856_v7  ;;  %v312_v20 = vld [vmem:[%s1414_s26 + $0x170] sm:$0xff]  ;;  %v321_v23 = vld [vmem:[%s1414_s26 + $0x1b8] sm:$0xff]  ;;  %v535_v38 = vld [vmem:[%s1420_s7 + $0x88] sm:$0xff] }
  0x8d   : > { %v862_v24 = vpack.c.bf16 %v312_v20, %v308_v19  ;;  %v864_v25 = vpack.c.bf16 %v321_v23, %v317_v22  ;;  %v316_v26 = vld [vmem:[%s1414_s26 + $0x190] sm:$0xff]  ;;  %v325_v29 = vld [vmem:[%s1414_s26 + $0x1d8] sm:$0xff]  ;;  %v872_v39 = vpack.c.bf16 %v535_v38, %v534_v37  ;;  %v518_v40 = vld [vmem:[%s1420_s7] sm:$0xff] }
  0x8e   : > { %827 = vmatpush1.bf16.msra.mxu0 %v826_v50  ;;  %v320_v27 = vld [vmem:[%s1414_s26 + $0x1b0] sm:$0xff]  ;;  %v329_v30 = vld [vmem:[%s1414_s26 + $0x1f8] sm:$0xff]  ;;  %v519_v41 = vld [vmem:[%s1420_s7 + $0x8] sm:$0xff] }
  0x8f   : > { %829 = vmatprep.subr.bf16.mxu0 %v828_v53  ;;  %859 = vmatpush1.bf16.msra.mxu1 %v858_v17  ;;  %v264_v28 = vld [vmem:[#allocation3] sm:$0xff]  ;;  %v866_v31 = vpack.c.bf16 %v320_v27, %v316_v26  ;;  %v868_v32 = vpack.c.bf16 %v329_v30, %v325_v29  ;;  %v265_v35 = vld [vmem:[#allocation3 + $0x8] sm:$0xff]  ;;  %v874_v42 = vpack.c.bf16 %v519_v41, %v518_v40  ;;  %v538_v48 = vld [vmem:[%s1420_s7 + $0xa0] sm:$0xff] }
  0x90   : > { %861 = vmatprep.subr.bf16.mxu1 %v860_v18  ;;  %v324_v33 = vld [vmem:[%s1414_s26 + $0x1d0] sm:$0xff]  ;;  %v537_v44 = vld [vmem:[%s1420_s7 + $0x98] sm:$0xff]  ;;  %v539_v49 = vld [vmem:[%s1420_s7 + $0xa8] sm:$0xff] }
  0x91   : > { %v328_v34 = vld [vmem:[%s1414_s26 + $0x1f0] sm:$0xff]  ;;  %v521_v46 = vld [vmem:[%s1420_s7 + $0x18] sm:$0xff]  ;;  %v880_v50 = vpack.c.bf16 %v539_v49, %v538_v48  ;;  %v522_v51 = vld [vmem:[%s1420_s7 + $0x20] sm:$0xff] }
  0x92   : > { %831 = vmatpush1.bf16.msra.mxu0 %v830_v62  ;;  %v870_v36 = vpack.c.bf16 %v328_v34, %v324_v33  ;;  %v536_v43 = vld [vmem:[%s1420_s7 + $0x90] sm:$0xff]  ;;  %v523_v52 = vld [vmem:[%s1420_s7 + $0x28] sm:$0xff]  ;;  %v541_v55 = vld [vmem:[%s1420_s7 + $0xb8] sm:$0xff] }
  0x93   : > { %833 = vmatprep.subr.bf16.mxu0 %v832_v1  ;;  %863 = vmatpush1.bf16.msra.mxu1 %v862_v24  ;;  %v876_v45 = vpack.c.bf16 %v537_v44, %v536_v43  ;;  %v882_v53 = vpack.c.bf16 %v523_v52, %v522_v51  ;;  %v540_v54 = vld [vmem:[%s1420_s7 + $0xb0] sm:$0xff]  ;;  %v525_v58 = vld [vmem:[%s1420_s7 + $0x38] sm:$0xff]  ;;  %v542_v60 = vld [vmem:[%s1420_s7 + $0xc0] sm:$0xff] }
  0x94   : > { %865 = vmatprep.subr.bf16.mxu1 %v864_v25  ;;  %v884_v56 = vpack.c.bf16 %v541_v55, %v540_v54  ;;  %v524_v57 = vld [vmem:[%s1420_s7 + $0x30] sm:$0xff]  ;;  %v543_v61 = vld [vmem:[%s1420_s7 + $0xc8] sm:$0xff]  ;;  %v526_v63 = vld [vmem:[%s1420_s7 + $0x40] sm:$0xff] }
  0x95   : > { %v886_v59 = vpack.c.bf16 %v525_v58, %v524_v57  ;;  %v888_v62 = vpack.c.bf16 %v543_v61, %v542_v60  ;;  %v527_v0 = vld [vmem:[%s1420_s7 + $0x48] sm:$0xff]  ;;  %v544_v2 = vld [vmem:[%s1420_s7 + $0xd0] sm:$0xff]  ;;  %v545_v3 = vld [vmem:[%s1420_s7 + $0xd8] sm:$0xff] }
  0x96   : > { %835 = vmatpush1.bf16.msra.mxu0 %v834_v11  ;;  %v890_v1 = vpack.c.bf16 %v527_v0, %v526_v63  ;;  %v892_v4 = vpack.c.bf16 %v545_v3, %v544_v2  ;;  %v528_v5 = vld [vmem:[%s1420_s7 + $0x50] sm:$0xff]  ;;  %v529_v6 = vld [vmem:[%s1420_s7 + $0x58] sm:$0xff]  ;;  %v546_v9 = vld [vmem:[%s1420_s7 + $0xe0] sm:$0xff] }
  0x97   : > { %837 = vmatprep.subr.bf16.mxu0 %v836_v14  ;;  %867 = vmatpush1.bf16.msra.mxu1 %v866_v31  ;;  %v894_v7 = vpack.c.bf16 %v529_v6, %v528_v5  ;;  %v547_v10 = vld [vmem:[%s1420_s7 + $0xe8] sm:$0xff]  ;;  %v530_v12 = vld [vmem:[%s1420_s7 + $0x60] sm:$0xff]  ;;  %v548_v15 = vld [vmem:[%s1420_s7 + $0xf0] sm:$0xff] }
  0x98   : > { %869 = vmatprep.subr.bf16.mxu1 %v868_v32  ;;  %v896_v11 = vpack.c.bf16 %v547_v10, %v546_v9  ;;  %v531_v13 = vld [vmem:[%s1420_s7 + $0x68] sm:$0xff]  ;;  %v549_v16 = vld [vmem:[%s1420_s7 + $0xf8] sm:$0xff]  ;;  %v532_v18 = vld [vmem:[%s1420_s7 + $0x70] sm:$0xff] }
  0x99   : > { %v898_v14 = vpack.c.bf16 %v531_v13, %v530_v12  ;;  %v900_v17 = vpack.c.bf16 %v549_v16, %v548_v15  ;;  %v533_v19 = vld [vmem:[%s1420_s7 + $0x78] sm:$0xff]  ;;  %v517_v58 = vld [vmem:[#allocation2 + $0x8] sm:$0xff] }
  0x9a   : > { %839 = vmatpush1.bf16.msra.mxu0 %v838_v21  ;;  %v902_v20 = vpack.c.bf16 %v533_v19, %v532_v18 }
  0x9b   : > { %871 = vmatpush1.bf16.msra.mxu1 %v870_v36  ;;  %873 = vmatprep.subr.bf16.mxu0 %v872_v39 }
  0x9c   : > { %904 = vmatprep.subr.bf16.mxu1 %v872_v39 }
  0x9d   : > { %395 = vmatmul.mubr.f32.vlgmr.msra.gmra.mrb[0].mxu0 %v264_v28 }
  0x9e   : > { %400 = vmatprep.mubr.f32.mxu0 %v1206_v8  ;;  %472 = vmatmul.mubr.f32.vlgmr.msra.gmra.mrb[0].mxu1 %v264_v28 }
  0x9f   : > { %477 = vmatprep.mubr.f32.mxu1 %v1206_v8  ;;  %875 = vmatpush3.bf16.msra.mxu0 %v874_v42  ;;  %v520_v8 = vld [vmem:[%s1420_s7 + $0x10] sm:$0xff] }
  0xa0   : > { %912 = vmatpush3.bf16.msra.mxu1 %v874_v42  ;;  %v878_v47 = vpack.c.bf16 %v521_v46, %v520_v8  ;;  %877 = vmatprep.subr.bf16.mxu0 %v876_v45 }
  0xa1   : > { %401 = vmatmul.mubr.f32.gmra.mrb[2].mxu0 %v265_v35  ;;  %905 = vmatprep.subr.bf16.mxu1 %v876_v45 }
  0xa2   : > { %478 = vmatmul.mubr.f32.gmra.mrb[2].mxu1 %v265_v35 }
  0xa3   : > { %879 = vmatpush3.bf16.msra.mxu0 %v878_v47 }
  0xa4   : > { %913 = vmatpush3.bf16.msra.mxu1 %v878_v47  ;;  %881 = vmatprep.subr.bf16.mxu0 %v880_v50 }
  0xa5   : > { %906 = vmatprep.subr.bf16.mxu1 %v880_v50 }
  0xa7   : > { %883 = vmatpush3.bf16.msra.mxu0 %v882_v53 }
  0xa8   : > { %914 = vmatpush3.bf16.msra.mxu1 %v882_v53  ;;  %885 = vmatprep.subr.bf16.mxu0 %v884_v56  ;;  %v516_v53 = vld [vmem:[#allocation2] sm:$0xff] }
  0xa9   : > { %907 = vmatprep.subr.bf16.mxu1 %v884_v56 }
  0xab   : > { %887 = vmatpush3.bf16.msra.mxu0 %v886_v59 }
  0xac   : > { %915 = vmatpush3.bf16.msra.mxu1 %v886_v59  ;;  %889 = vmatprep.subr.bf16.mxu0 %v888_v62 }
  0xad   : > { %908 = vmatprep.subr.bf16.mxu1 %v888_v62 }
  0xaf   : > { %891 = vmatpush3.bf16.msra.mxu0 %v890_v1 }
  0xb0   : > { %916 = vmatpush3.bf16.msra.mxu1 %v890_v1  ;;  %893 = vmatprep.subr.bf16.mxu0 %v892_v4 }
  0xb1   : > { %909 = vmatprep.subr.bf16.mxu1 %v892_v4 }
  0xb3   : > { %895 = vmatpush3.bf16.msra.mxu0 %v894_v7 }
  0xb4   : > { %917 = vmatpush3.bf16.msra.mxu1 %v894_v7  ;;  %897 = vmatprep.subr.bf16.mxu0 %v896_v11 }
  0xb5   : > { %910 = vmatprep.subr.bf16.mxu1 %v896_v11 }
  0xb7   : > { %899 = vmatpush3.bf16.msra.mxu0 %v898_v14 }
  0xb8   : > { %918 = vmatpush3.bf16.msra.mxu1 %v898_v14  ;;  %901 = vmatprep.subr.bf16.mxu0 %v900_v17 }
  0xb9   : > { %911 = vmatprep.subr.bf16.mxu1 %v900_v17 }
  0xbb   : > { %903 = vmatpush3.bf16.msra.mxu0 %v902_v20 }
  0xbc   : > { %919 = vmatpush3.bf16.msra.mxu1 %v902_v20 }
 0x170   : > { %v396_v21 = vpop.f32.mrb[0].mxu0 }
 0x171   : > { %v759_v22 = vmul.f32 -1.442695, %v396_v21  ;;  %v398_v23 = vpop.f32.mrb[1].mxu0  ;;  %v473_v29 = vpop.f32.mrb[0].mxu1 }
 0x172   : > { %v760_v24 = vmul.f32 -1.442695, %v398_v23  ;;  %v475_v30 = vpop.f32.mrb[1].mxu1 }
 0x173   : > { %1007 = vpow2.f32 %v759_v22 }
 0x174   : > { %1009 = vpow2.f32 %v760_v24  ;;  %v402_v25 = vpop.f32.mrb[2].mxu0 }
 0x175   : > { %v761_v26 = vmul.f32 -1.442695, %v402_v25  ;;  %v404_v27 = vpop.f32.mrb[3].mxu0  ;;  %v479_v34 = vpop.f32.mrb[2].mxu1 }
 0x176   : > { %v762_v28 = vmul.f32 -1.442695, %v404_v27  ;;  %v481_v36 = vpop.f32.mrb[3].mxu1 }
 0x177   : > { %1011 = vpow2.f32 %v761_v26 }
 0x178   : > { %1013 = vpow2.f32 %v762_v28 }
 0x17d   : > { %v1008_v31 = vpop.eup %1007 }
 0x17e   : > { %v1010_v32 = vpop.eup %1009  ;;  %v496_v33 = vadd.f32 1.0, %v1008_v31 }
 0x17f   : > { %v497_v35 = vadd.f32 1.0, %v1010_v32 }
 0x180   : > { %1015 = vrcp.f32 %v496_v33 }
 0x181   : > { %v1012_v37 = vpop.eup %1011  ;;  %1017 = vrcp.f32 %v497_v35 }
 0x182   : > { %v1014_v38 = vpop.eup %1013  ;;  %v498_v39 = vadd.f32 1.0, %v1012_v37 }
 0x183   : > { %v499_v40 = vadd.f32 1.0, %v1014_v38 }
 0x184   : > { %1019 = vrcp.f32 %v498_v39 }
 0x185   : > { %1021 = vrcp.f32 %v499_v40 }
 0x18a   : > { %v1016_v41 = vpop.eup %1015 }
 0x18b   : > { %v1018_v42 = vpop.eup %1017  ;;  %v508_v43 = vmul.f32 %v1016_v41, %v396_v21 }
 0x18c   : > { %v509_v44 = vmul.f32 %v1018_v42, %v398_v23 }
 0x18d   : > { %v512_v45 = vmul.f32 %v508_v43, %v473_v29 }
 0x18e   : > { %v1020_v8 = vpop.eup %1019  ;;  %v513_v46 = vmul.f32 %v509_v44, %v475_v30 }
 0x18f   : > { %v1022_v47 = vpop.eup %1021  ;;  %v510_v48 = vmul.f32 %v1020_v8, %v402_v25 }
 0x190   : > { %v511_v49 = vmul.f32 %v1022_v47, %v404_v27  ;;  %614 = vmatprep.mubr.f32.mxu0 %v513_v46 }
 0x191   : > { %v514_v50 = vmul.f32 %v510_v48, %v479_v34  ;;  %615 = vmatmul.mubr.f32.vlgmr.msra.gmra.mrb[4].mxu0 %v512_v45 }
 0x192   : > { %v515_v51 = vmul.f32 %v511_v49, %v481_v36 }
 0x194   : > { %619 = vmatprep.mubr.f32.mxu1 %v515_v51 }
 0x195   : > { %620 = vmatmul.mubr.f32.vlgmr.msra.gmra.mrb[4].mxu1 %v514_v50 }
 0x264   : > { %v802_v52 = vpop.f32.mrb[4].mxu0 }
 0x265   : > { %v803_v54 = vpop.f32.mrb[5].mxu0 }
 0x266   : > { %v804_v55 = vadd.f32 %v803_v54, %v802_v52 }
 0x268   : > { %v625_v56 = vadd.f32 %v804_v55, %v516_v53  ;;  %v805_v57 = vpop.f32.mrb[4].mxu1  ;;  %632 = sbr.rel (%p763_p0) target bundleno = 631 (0x277), region = 52 }
 0x269   : > { %v806_v59 = vpop.f32.mrb[5].mxu1 }
 0x26a   : > { %627 = vst [vmem:[#allocation2] sm:$0xff] %v625_v56  ;;  %v807_v60 = vadd.f32 %v806_v59, %v805_v57 }
 0x26c   : > { %v626_v61 = vadd.f32 %v807_v60, %v517_v58 }
 0x26e   : > { %628 = vst [vmem:[#allocation2 + $0x8] sm:$0xff] %v626_v61 }
 0x271   : > { %v633_v62 = vld [vmem:[#allocation2] sm:$0xff] }
 0x272   : > { %635 = vst [vmem:[#allocation9] sm:$0xff] %v633_v62 }
 0x275   : > { %v634_v63 = vld [vmem:[#allocation2 + $0x8] sm:$0xff] }
 0x276   : > { %636 = vst [vmem:[#allocation9 + $0x8] sm:$0xff] %v634_v63 }
 0x277 PF: > { %p946_p5 = scmp.eq.s32.totalorder %s1318_s30, 1  ;;  %s1207_s6 = smov [#allocation9]  }
 0x278   : > { %s646_s19 = sshll.u32 %s1207_s6, 4  ;;  %s647_s19 = int_to_ptr.vmem [resolvable:$true] %s646_s19 }
 0x279   : > { %s1111_s21 = scalar_lea.vmem %s647_s19, 256  ;;  %p1118_p13 = scmp.lt.s32.totalorder %s647_s19, %s647_s19 }
 0x27a   : > { %p1112_p1 = scmp.ne.s32.totalorder %s647_s19, %s1111_s21  ;;  %p1119_p2 = scmp.lt.s32.totalorder %s1111_s21, %s1111_s21 }
 0x27c   : > { %p1113_p4 = pnand %p1112_p1, %p946_p5  ;;  %p1120_p7 = por %p1119_p2, %p1118_p13 }
 0x27e   : > { %p1114_p8 = pneg %p1113_p4 }
 0x280   : > { %p1121_p9 = pnand %p1120_p7, %p1114_p8 }
 0x282   : > { %1124 = shalt.err (!%p1121_p9)
}
 0x283   : > { %s1125_s11 = scalar_lea.hbm %s1568_s3, 256 }
 0x284   : > { %p1126_p3 = scmp.ne.s32.totalorder %s1568_s3, %s1125_s11  ;;  %p1131_p10 = scmp.lt.u32.totalorder %s1125_s11, %s1568_s3 }
 0x286   : > { %p1127_p11 = pnand %p1126_p3, %p946_p5 }
 0x288   : > { %p1128_p12 = pneg %p1127_p11 }
 0x28a   : > { %p1133_p6 = pnand %p1131_p10, %p1128_p12 }
 0x28c   : > { %1136 = shalt.err (!%p1133_p6)
}
 0x28d   : > { %s1208_s9 = smov 128   ;;  %s1209_s12 = smov 8  }
 0x28e   : > { %929 = dma.vmem_to_hbm [thread:$0]  (%p946_p5), %s647_s19, 256, %s1568_s3, [#allocation5], %s1208_s9, %s1208_s9, %s1209_s12  }
 0x28f   : > { %1170 = dma.done.wait (%p946_p5), [#allocation5], 256  }
 0x290   : > { %1172 = vsyncadd (%p946_p5), [#allocation5], 4294967040 }
 0x291 PF: > { %s18_s17 = sadd.s32 1, %s1195_s17   ;;  %s1586_s12 = smov %s1179_s13 }
 0x292   : > { %p15_p0 = scmp.ge.s32.totalorder %s18_s17, 4   ;;  %s1587_s13 = smov %s1183_s14 }
 0x293   : > { %s1588_s14 = smov %s1274_s24  ;;  %s1589_s15 = smov %s1191_s16 }
 0x294   : > { %s1590_s16 = smov %s1592_s18  ;;  %17 = sbr.rel (!%p15_p0) target bundleno = 6 (0x6), region = 95 }
 0x29b   :  { %662 = vsyncpa [#allocation4], 1 }
 0x29c   :  { %664 = vsyncpa [#allocation4 + $0x1], 1 }
 0x29d   :  { %665 = vsyncpa [#allocation7], 1 }
 0x29e   :  { %667 = vsyncpa [#allocation7 + $0x1], 1 }
 0x29f   :  { %668 = vsyncpa [#allocation5], 1 }
 0x2a0   :  { %670 = vsyncpa [#allocation5 + $0x1], 1 }

</bundles_post_ra>
